<compile_context>
chip_gen: v7x
topology: tpu7x:2x2x1
jax: 0.10.0
libtpu: 0.0.40
codegen_flags: <defaults>
</compile_context>

<pallas_src>
import functools

import jax
import jax.numpy as jnp
from jax.experimental import pallas as pl
from jax.experimental.pallas import tpu as pltpu

_NEG_INF = -1e30


def _vmem_limit_bytes():
    """Scoped-VMEM limit: ~100 MiB on 128-MiB parts (v5e/v6e), ~52 MiB on 64-MiB parts (v7x)."""
    try:
        cap = int(pltpu.get_tpu_info().vmem_capacity_bytes)
    except Exception:  # pragma: no cover - conservative fallback
        cap = 64 * 1024 * 1024
    if cap <= 64 * 1024 * 1024:
        return 52 * 1024 * 1024
    return 100 * 1024 * 1024


def _pick_tile(n, want):
    """Largest divisor of n that is <= want and a multiple of 8 (sublane), else n (full)."""
    if n <= want:
        return n
    for t in range(min(want, n), 7, -1):
        if n % t == 0 and t % 8 == 0:
            return t
    return n


# ---------------------------------------------------------------------------
# Kernel 1: row-tiled node projection  feat @ W^T  and attention logits el|er.
#   bf16 x bf16 MXU matmul with f32 accumulation; el/er come from one fused
#   (HF, 2H) block-diagonal matrix -> a single small MXU push per tile.
#   feat_src is emitted bf16 (halves HBM, feeds the bf16 MXU aggregation);
#   el|er keep full f32 precision.
# ---------------------------------------------------------------------------
def fc_attn_kernel(x_ref, w_ref, alr_ref, fs_ref, elr_ref):
    fs = jnp.dot(x_ref[...], w_ref[...], preferred_element_type=jnp.float32)
    elr_ref[...] = jnp.dot(fs, alr_ref[...], preferred_element_type=jnp.float32)
    fs_ref[...] = fs.astype(fs_ref.dtype)


def fc_attn(x_bf16, w_t_bf16, alr_bd, *, tile_n=512):
    N, Din = x_bf16.shape
    HF = w_t_bf16.shape[1]
    H2 = alr_bd.shape[1]
    tile = _pick_tile(N, tile_n)
    grid_spec = pltpu.PrefetchScalarGridSpec(
        num_scalar_prefetch=0,
        grid=(N // tile,),
        in_specs=[
            pl.BlockSpec((tile, Din), lambda i: (i, 0)),                 # feat rows (bf16)
            pl.BlockSpec((Din, HF), lambda i: (0, 0),
                         pipeline_mode=pl.Buffered(1)),                  # W^T resident
            pl.BlockSpec((HF, H2), lambda i: (0, 0),
                         pipeline_mode=pl.Buffered(1)),                  # [attn_l|attn_r] block-diag
        ],
        out_specs=[
            pl.BlockSpec((tile, HF), lambda i: (i, 0)),                  # feat_src (bf16)
            pl.BlockSpec((tile, H2), lambda i: (i, 0)),                  # el|er (f32)
        ],
    )
    return pl.pallas_call(
        fc_attn_kernel,
        out_shape=(
            jax.ShapeDtypeStruct((N, HF), jnp.bfloat16),
            jax.ShapeDtypeStruct((N, H2), jnp.float32),
        ),
        grid_spec=grid_spec,
        compiler_params=pltpu.CompilerParams(
            dimension_semantics=("parallel",),
            vmem_limit_bytes=_vmem_limit_bytes(),
        ),
    )(x_bf16, w_t_bf16, alr_bd)


# ---------------------------------------------------------------------------
# Kernel 2 (hot path): per-dst-tile, all-heads-fused edge attention, leaky-relu,
# masked edge-softmax over incoming edges, and aggregation rst = A @ feat_src.
# Inputs per edge: 1 byte (int8 etype with sentinel T = "no edge").  Grid over
# destination-row tiles only ("parallel"); residents single-buffered.
# ---------------------------------------------------------------------------
def gat_fused_kernel(ee_tab_ref, el_t_ref, elr_ref, et_ref, fs_ref, *out_refs,
                     num_heads, out_feats, num_etypes, negative_slope, write_attn):
    if write_attn:
        a_ref, rst_ref = out_refs
    else:
        (rst_ref,) = out_refs
    H, F, T = num_heads, out_feats, num_etypes
    ns = jnp.float32(negative_slope)

    # Per-tile precompute, shared across all heads (only these stay live).
    et = et_ref[...].astype(jnp.int32)                          # (TILE, Nsrc)
    no_edge = et == T                                           # sentinel -> mask

    # NOTE: precondition (matching the module's no-zero-in-degree check): every dst
    # row has at least one edge (e.g. self-loops), otherwise softmax is 0/0.
    parts = []
    for h in range(H):
        el_row = el_t_ref[h:h + 1, :]                           # (1, Nsrc)
        er_col = elr_ref[:, H + h:H + h + 1]                    # (TILE, 1)
        logits = er_col + el_row                                # (TILE, Nsrc)
        # Fold the per-edge-type attention scalar into the logits; re-doing the cheap
        # VPU compare per head avoids holding T boolean masks live across the unroll.
        for t in range(T):
            logits = jnp.where(et == t, logits + ee_tab_ref[t, h], logits)
        # leaky relu without compare+select
        logits = jnp.maximum(logits, ns * logits)
        # masked softmax over incoming edges (src axis); -1e30 makes exp() exactly 0
        # on non-edges, so no post-exp `* adj` is needed.
        masked = jnp.where(no_edge, jnp.float32(_NEG_INF), logits)
        m = jnp.max(masked, axis=-1, keepdims=True)
        p = jnp.exp(masked - m)
        denom = jnp.sum(p, axis=-1, keepdims=True)
        a = p * pl.reciprocal(denom, approx=True)               # EUP divide
        if write_attn:
            a_ref[h] = a.astype(a_ref.dtype)

        # Aggregation on the MXU: bf16 operands, f32 accumulation.
        feat_h = fs_ref[:, h * F:(h + 1) * F]                   # (Nsrc, F) bf16
        parts.append(jnp.dot(a.astype(jnp.bfloat16), feat_h,
                             preferred_element_type=jnp.float32))

    # One full-width lane-dense store instead of H narrow masked stores.
    rst_ref[...] = jnp.concatenate(parts, axis=-1).astype(rst_ref.dtype)


def gat_fused(ee_tab, el_t, elr, et_packed, fs, *, num_heads, out_feats,
              num_etypes, negative_slope=0.2, tile_dst=256, return_attn=True,
              attn_dtype=jnp.bfloat16):
    H, F, T = num_heads, out_feats, num_etypes
    N_dst, N_src = et_packed.shape
    HF = H * F
    tile = _pick_tile(N_dst, tile_dst)

    kernel = functools.partial(
        gat_fused_kernel, num_heads=H, out_feats=F, num_etypes=T,
        negative_slope=negative_slope, write_attn=return_attn)

    in_specs = [
        pl.BlockSpec(memory_space=pltpu.MemorySpace.SMEM),                # ee_tab (T, H)
        pl.BlockSpec((H, N_src), lambda d: (0, 0),
                     pipeline_mode=pl.Buffered(1)),                       # el^T resident
        pl.BlockSpec((tile, 2 * H), lambda d: (d, 0)),                    # el|er rows (er used)
        pl.BlockSpec((tile, N_src), lambda d: (d, 0)),                    # etype+mask (int8)
        pl.BlockSpec((N_src, HF), lambda d: (0, 0),
                     pipeline_mode=pl.Buffered(1)),                       # feat_src bf16 slab
    ]
    rst_spec = pl.BlockSpec((tile, HF), lambda d: (d, 0))                 # lane-dense slab
    rst_shape = jax.ShapeDtypeStruct((N_dst, HF), jnp.float32)
    if return_attn:
        out_specs = [pl.BlockSpec((H, tile, N_src), lambda d: (0, d, 0)), rst_spec]
        out_shape = (jax.ShapeDtypeStruct((H, N_dst, N_src), attn_dtype), rst_shape)
    else:
        out_specs = [rst_spec]
        out_shape = (rst_shape,)

    grid_spec = pltpu.PrefetchScalarGridSpec(
        num_scalar_prefetch=0,
        grid=(N_dst // tile,),
        in_specs=in_specs,
        out_specs=out_specs,
    )
    outs = pl.pallas_call(
        kernel,
        out_shape=out_shape,
        grid_spec=grid_spec,
        compiler_params=pltpu.CompilerParams(
            dimension_semantics=("parallel",),
            vmem_limit_bytes=_vmem_limit_bytes(),
        ),
    )(ee_tab, el_t, elr, et_packed, fs)
    if return_attn:
        a, rst = outs
        return a, rst
    return None, outs[0]


# ---------------------------------------------------------------------------
# One-time prep (hoisted out of the per-call forward) + orchestration.
# ---------------------------------------------------------------------------
def block_diag_attn(a):
    """(H, F) attn vector -> (H*F, H) block-diagonal matrix for MXU reduction."""
    H, F = a.shape
    eye = jnp.eye(H, dtype=a.dtype)
    return (a[:, :, None] * eye[:, None, :]).reshape(H * F, H)


def prepare_graph(adj, etype, num_etypes):
    """One-time: fold the adjacency mask into the etype stream (sentinel id = T) as int8."""
    assert num_etypes <= 126, "int8 etype packing (with sentinel) requires num_etypes <= 126"
    et = jnp.where(adj > 0.5, etype.astype(jnp.int32), jnp.int32(num_etypes))
    return et.astype(jnp.int8)


def my_gat_conv_prepare(params):
    """One-time parameter repack (weights transposed / bf16, attn vectors block-diag, edge table)."""
    H, F, E, T = (params["num_heads"], params["out_feats"],
                  params["edge_feats"], params["num_etypes"])
    w_t = params["fc_w"].T.astype(jnp.bfloat16)                              # (Din, H*F)
    alr_bd = jnp.concatenate(
        [block_diag_attn(params["attn_l"]), block_diag_attn(params["attn_r"])],
        axis=1).astype(jnp.float32)                                          # (H*F, 2H)
    # Edge-type table (T,H): far too small for a pallas_call -> plain XLA, once.
    ef = (params["edge_emb"] @ params["fc_e_w"].T).reshape(T, H, E)
    ee_tab = (ef * params["attn_e"][None]).sum(-1).astype(jnp.float32)       # (T, H)
    return dict(w_t=w_t, alr_bd=alr_bd, ee_tab=ee_tab, num_heads=H, out_feats=F,
                num_etypes=T, negative_slope=params.get("negative_slope", 0.2))


def my_gat_conv_forward(prep, feat, et_packed, *, tile_dst=256, tile_n=512,
                        return_attn=True, attn_dtype=jnp.bfloat16):
    H, F = prep["num_heads"], prep["out_feats"]
    N = feat.shape[0]

    fs, elr = fc_attn(feat.astype(jnp.bfloat16), prep["w_t"], prep["alr_bd"],
                      tile_n=tile_n)                                         # (N,HF)bf16,(N,2H)f32
    el_t = elr[:, :H].T                        # tiny (H, N) — lets the hot kernel broadcast
                                               # el over the src (lane) axis.

    a, rst_slab = gat_fused(prep["ee_tab"], el_t, elr, et_packed, fs,
                            num_heads=H, out_feats=F, num_etypes=prep["num_etypes"],
                            negative_slope=prep["negative_slope"], tile_dst=tile_dst,
                            return_attn=return_attn, attn_dtype=attn_dtype)
    rst = rst_slab.reshape(N, H, F)            # free reshape (no transpose / extra HBM pass)
    return rst, a


# ---------------------------------------------------------------------------
# Pure-JAX reference (dense formulation of the DGL forward) for validation.
# ---------------------------------------------------------------------------
def reference_forward(params, feat, adj, etype):
    H, F, E, T = (params["num_heads"], params["out_feats"],
                  params["edge_feats"], params["num_etypes"])
    fs3 = (feat @ params["fc_w"].T).reshape(-1, H, F)
    el = (fs3 * params["attn_l"][None]).sum(-1)                # (N, H)
    er = (fs3 * params["attn_r"][None]).sum(-1)                # (N, H)
    ef = (params["edge_emb"] @ params["fc_e_w"].T).reshape(T, H, E)
    ee_t = (ef * params["attn_e"][None]).sum(-1)               # (T, H)
    ee = ee_t[etype]                                           # (Ndst, Nsrc, H)
    logits = er[:, None, :] + el[None, :, :] + ee
    logits = jnp.where(logits >= 0, logits, 0.2 * logits)
    mask = adj[:, :, None] > 0.5
    masked = jnp.where(mask, logits, _NEG_INF)
    m = masked.max(axis=1, keepdims=True)
    p = jnp.exp(masked - m) * adj[:, :, None]
    a = p / p.sum(axis=1, keepdims=True)
    rst = jnp.einsum("dsh,shf->dhf", a, fs3)
    return rst, a.transpose(2, 0, 1)


if __name__ == "__main__":
    # Small, deterministic problem instance (tiles chosen so both grids have 2 steps).
    N, Din, H, F, E, T = 256, 32, 4, 16, 16, 5
    TILE_DST, TILE_N = 128, 128

    key = jax.random.PRNGKey(0)
    ks = jax.random.split(key, 10)

    gain = 2.0 ** 0.5  # nn.init.calculate_gain('relu')

    def xavier(k, shape, fan_in, fan_out):
        std = gain * (2.0 / (fan_in + fan_out)) ** 0.5
        return (std * jax.random.normal(k, shape)).astype(jnp.float32)

    params = dict(
        num_heads=H, out_feats=F, edge_feats=E, num_etypes=T, negative_slope=0.2,
        fc_w=xavier(ks[0], (H * F, Din), Din, H * F),          # nn.Linear(Din, H*F)
        fc_e_w=xavier(ks[1], (H * E, E), E, H * E),            # nn.Linear(E, H*E)
        attn_l=xavier(ks[2], (H, F), H * F, F),                # (1, H, F) squeezed
        attn_r=xavier(ks[3], (H, F), H * F, F),
        attn_e=xavier(ks[4], (H, E), H * E, E),
        edge_emb=jax.random.normal(ks[5], (T, E), jnp.float32),  # nn.Embedding init
    )

    # Dense graph with self-loops (guarantees no zero in-degree node).
    adj = (jax.random.uniform(ks[6], (N, N)) < 0.25).astype(jnp.float32)
    adj = jnp.maximum(adj, jnp.eye(N, dtype=jnp.float32))
    etype = jax.random.randint(ks[7], (N, N), 0, T, dtype=jnp.int32)
    feat = jax.random.normal(ks[8], (N, Din), jnp.float32)

    # One-time prep (hoisted out of the forward path).
    prep = my_gat_conv_prepare(params)
    et_packed = prepare_graph(adj, etype, T)        # 1 byte/edge; adj folded as sentinel T

    # Default path (module semantics: also returns the attention map).
    rst, attn = my_gat_conv_forward(prep, feat, et_packed,
                                    tile_dst=TILE_DST, tile_n=TILE_N, return_attn=True)
    jax.block_until_ready((rst, attn))

    # Fast path: skip the (H, N, N) attention write entirely.
    rst_fast, attn_none = my_gat_conv_forward(prep, feat, et_packed,
                                              tile_dst=TILE_DST, tile_n=TILE_N,
                                              return_attn=False)
    jax.block_until_ready(rst_fast)

    rst_ref, attn_ref = reference_forward(params, feat, adj, etype)
    assert rst.shape == (N, H, F) and attn.shape == (H, N, N)
    assert attn_none is None
    assert jnp.allclose(rst, rst_ref, rtol=4e-2, atol=4e-2)
    assert jnp.allclose(rst_fast, rst_ref, rtol=4e-2, atol=4e-2)
    assert jnp.allclose(attn.astype(jnp.float32), attn_ref, rtol=4e-2, atol=4e-2)

    print("KERNEL_OK")
</pallas_src>

<mosaic_0001>
module attributes {stable_mosaic.version = 11 : i64} {
  func.func @fc_attn_kernel(%arg0: i32, %arg1: memref<128x32xbf16, #tpu.memory_space<vmem>>, %arg2: memref<32x64xbf16, #tpu.memory_space<vmem>>, %arg3: memref<64x8xf32, #tpu.memory_space<vmem>>, %arg4: memref<128x64xbf16, #tpu.memory_space<vmem>>, %arg5: memref<128x8xf32, #tpu.memory_space<vmem>>) attributes {dimension_semantics = [#tpu.dimension_semantics<parallel>], iteration_bounds = array<i64: 2>, scalar_prefetch = 0 : i64, scratch_operands = 0 : i64, tpu.core_type = #tpu.core_type<tc>, window_params = [{transform_indices = @transform_0, window_bounds = array<i64: 128, 32>}, {pipeline_mode = #tpu.pipeline_mode<synchronous>, transform_indices = @transform_1, window_bounds = array<i64: 32, 64>}, {pipeline_mode = #tpu.pipeline_mode<synchronous>, transform_indices = @transform_2, window_bounds = array<i64: 64, 8>}, {transform_indices = @transform_3, window_bounds = array<i64: 128, 64>}, {transform_indices = @transform_4, window_bounds = array<i64: 128, 8>}]} {
    %c0 = arith.constant 0 : index
    %c0_0 = arith.constant 0 : index
    %0 = vector.load %arg1[%c0, %c0_0] : memref<128x32xbf16, #tpu.memory_space<vmem>>, vector<128x32xbf16>
    %c0_1 = arith.constant 0 : index
    %c0_2 = arith.constant 0 : index
    %1 = vector.load %arg2[%c0_1, %c0_2] : memref<32x64xbf16, #tpu.memory_space<vmem>>, vector<32x64xbf16>
    %cst = arith.constant dense<0.000000e+00> : vector<128x64xf32>
    %2 = tpu.matmul %0, %1, %cst {dimension_numbers = #tpu.dot_dimension_numbers<[1], [0], [0], [1], [0, 0, 1, 1], [], []>} : vector<128x32xbf16>, vector<32x64xbf16>, vector<128x64xf32> -> vector<128x64xf32>
    %c0_3 = arith.constant 0 : index
    %c0_4 = arith.constant 0 : index
    %3 = vector.load %arg3[%c0_3, %c0_4] : memref<64x8xf32, #tpu.memory_space<vmem>>, vector<64x8xf32>
    %cst_5 = arith.constant dense<0.000000e+00> : vector<128x8xf32>
    %4 = tpu.matmul %2, %3, %cst_5 {dimension_numbers = #tpu.dot_dimension_numbers<[1], [0], [0], [1], [0, 0, 1, 1], [], []>} : vector<128x64xf32>, vector<64x8xf32>, vector<128x8xf32> -> vector<128x8xf32>
    %c0_6 = arith.constant 0 : index
    %c0_7 = arith.constant 0 : index
    %5 = vector.load %arg5[%c0_6, %c0_7] : memref<128x8xf32, #tpu.memory_space<vmem>>, vector<128x8xf32>
    tpu.vector_store %arg5[%c0_6, %c0_7], %4 {strides = array<i32>} : memref<128x8xf32, #tpu.memory_space<vmem>>, vector<128x8xf32>,
    %6 = arith.truncf %2 : vector<128x64xf32> to vector<128x64xbf16>
    %c0_8 = arith.constant 0 : index
    %c0_9 = arith.constant 0 : index
    %7 = vector.load %arg4[%c0_8, %c0_9] : memref<128x64xbf16, #tpu.memory_space<vmem>>, vector<128x64xbf16>
    tpu.vector_store %arg4[%c0_8, %c0_9], %6 {strides = array<i32>} : memref<128x64xbf16, #tpu.memory_space<vmem>>, vector<128x64xbf16>,
    return
  }
  func.func @transform_0(%arg0: i32) -> (i32, i32) {
    %c0_i32 = arith.constant 0 : i32
    %c0_i32_0 = arith.constant 0 : i32
    return %arg0, %c0_i32 : i32, i32
  }
  func.func @transform_1(%arg0: i32) -> (i32, i32) {
    %c0_i32 = arith.constant 0 : i32
    %c0_i32_0 = arith.constant 0 : i32
    %c0_i32_1 = arith.constant 0 : i32
    return %c0_i32, %c0_i32_0 : i32, i32
  }
  func.func @transform_2(%arg0: i32) -> (i32, i32) {
    %c0_i32 = arith.constant 0 : i32
    %c0_i32_0 = arith.constant 0 : i32
    %c0_i32_1 = arith.constant 0 : i32
    return %c0_i32, %c0_i32_0 : i32, i32
  }
  func.func @transform_3(%arg0: i32) -> (i32, i32) {
    %c0_i32 = arith.constant 0 : i32
    %c0_i32_0 = arith.constant 0 : i32
    return %arg0, %c0_i32 : i32, i32
  }
  func.func @transform_4(%arg0: i32) -> (i32, i32) {
    %c0_i32 = arith.constant 0 : i32
    %c0_i32_0 = arith.constant 0 : i32
    return %arg0, %c0_i32 : i32, i32
  }
}

</mosaic_0001>

<bundles_post_ra>
// kernel: tpu_custom_call.1
= control target key start
LH: loop header
LB: loop body
LE: loop exit
PB: predicated region body
PF: predicated region fallthrough
CT: control target
= control target key end

     0   :  { %s1048_s15 = smov 0   ;;  %s1208_s0 = inlined_call_operand.vmem [shape: bf16[256,32], index: 0, kind: input, shape index: {}]   ;;  %s1209_s1 = inlined_call_operand.vmem [shape: bf16[32,64], index: 1, kind: input, shape index: {}]   ;;  %s1210_s2 = inlined_call_operand.vmem [shape: f32[64,8], index: 2, kind: input, shape index: {}]   ;;  %s1211_s3 = inlined_call_operand.vmem [shape: bf16[256,64], index: 3, kind: output, shape index: {0}]   ;;  %s1212_s4 = inlined_call_operand.vmem [shape: f32[256,8], index: 4, kind: output, shape index: {1}]  }
   0x1 LB: > { %s800_s16 = sadd.s32 4294967295, %s1021_s15   ;;  %p804_p0 = scmp.ge.s32.totalorder %s1021_s15, 1  ;;  %s1021_s15 = sphi %s1048_s15, %s15_s15  }
   0x2   : > { %p166_p1 = scmp.lt.s32.totalorder %s1021_s15, 3 }
   0x4   : > { %p167_p2 = pnand %p804_p0, %p166_p1 }
   0x5   : > { %v1005_v0 = vld [vmem:[%s1209_s1] sm:$0xff] (!%p167_p2)   ;;  %s805_s19 = sshll.u32 (!%p167_p2), %s800_s16, 4  ;;  %v1006_v1 = vld [vmem:[%s1209_s1 + $0x8] sm:$0xff] (!%p167_p2)   ;;  %v412_v4 = vld [vmem:[%s1210_s2 + $0x10] sm:$0xff] (!%p167_p2)  ;;  %vm288_vm0 = vcmask (!%p167_p2), 261120   ;;  %vm418_vm1 = vcmask (!%p167_p2), 523264  }
   0x6   : > { %170 = sbr.rel (%p167_p2) target bundleno = 475 (0x1db), region = 32  ;;  %p198_p3 = scmp.lt.s32.totalorder (!%p167_p2), %s805_s19, 31  ;;  %913 = vmatprep.subr.bf16.mxu0 (!%p167_p2), %v1005_v0  ;;  %v410_v2 = vld [vmem:[%s1210_s2] sm:$0xff] (!%p167_p2)  ;;  %v411_v3 = vld [vmem:[%s1210_s2 + $0x8] sm:$0xff] (!%p167_p2)  ;;  %v413_v6 = vld [vmem:[%s1210_s2 + $0x18] sm:$0xff] (!%p167_p2)  ;;  %vm693_vm2 = vcmask (!%p167_p2), 519168  }
   0x7   : > { %914 = vmatpush3.bf16.msra.mxu0 (!%p167_p2), %v1005_v0  ;;  %v973_v5 = vpack.c.bf16 (!%p167_p2), %v411_v3, %v410_v2  ;;  %v977_v7 = vpack.c.bf16 (!%p167_p2), %v413_v6, %v412_v4  ;;  %v414_v8 = vld [vmem:[%s1210_s2 + $0x20] sm:$0xff] (!%p167_p2)  ;;  %v415_v9 = vld [vmem:[%s1210_s2 + $0x28] sm:$0xff] (!%p167_p2)  ;;  %v416_v10 = vld [vmem:[%s1210_s2 + $0x30] sm:$0xff] (!%p167_p2)  ;;  %vm612_vm3 = vcmask (!%p167_p2), 64512  }
   0x8   : > { %915 = vmatprep.subr.bf16.mxu0 (!%p167_p2), %v1006_v1  ;;  %v417_v11 = vld [vmem:[%s1210_s2 + $0x38] sm:$0xff] (!%p167_p2)  ;;  %v981_v14 = vpack.c.bf16 (!%p167_p2), %v415_v9, %v414_v8 }
   0x9   : > { %989 = vmatprep.subr.bf16.mxu1 (!%p167_p2), %v973_v5  ;;  %v985_v16 = vpack.c.bf16 (!%p167_p2), %v417_v11, %v416_v10 }
   0xa   : > { %993 = vmatpush3.bf16.msra.mxu1 (!%p167_p2), %v973_v5 }
   0xb   : > { %916 = vmatpush3.bf16.msra.mxu0 (!%p167_p2), %v1006_v1  ;;  %990 = vmatprep.subr.bf16.mxu1 (!%p167_p2), %v977_v7 }
   0xc   : > { %974 = vmatprep.subr.bf16.mxu0 (!%p167_p2), %v973_v5 }
   0xd   : > { %s1214_s19 = smov (!%p198_p3, %s805_s19), 31 }
   0xe   : > { %s806_s30 = sshll.u32 %s1214_s19, 2  ;;  %994 = vmatpush3.bf16.msra.mxu1 %v977_v7  ;;  %s810_s21 = sshll.u32 %s1214_s19, 3 }
   0xf   : > { %s1088_s11 = scalar_lea.vmem %s1208_s0, %s806_s30  ;;  %991 = vmatprep.subr.bf16.mxu1 %v981_v14  ;;  %s1117_s20 = scalar_lea.vmem %s1211_s3, %s806_s30 }
  0x10   : > { %v1007_v12 = vld [vmem:[%s1088_s11] sm:$0xff]   ;;  %v1008_v13 = vld [vmem:[%s1088_s11 + $0x8] sm:$0xff]   ;;  %v1009_v15 = vld [vmem:[%s1088_s11 + $0x10] sm:$0xff]   ;;  %s1171_s24 = scalar_lea.vmem %s1212_s4, %s810_s21 }
  0x11   : > { %917 = vmatprep.mubr.msk.bf16.mxu0 %vm288_vm0, %v1007_v12  ;;  %v1010_v17 = vld [vmem:[%s1088_s11 + $0x18] sm:$0xff]   ;;  %v1011_v18 = vld [vmem:[%s1088_s11 + $0x20] sm:$0xff]   ;;  %v1012_v19 = vld [vmem:[%s1088_s11 + $0x28] sm:$0xff]  }
  0x12   : > { %918 = vmatmul.mubr.msk.bf16.vlgmr.msra.gmra.mrb[0].mxu0 %vm288_vm0, %v1008_v13  ;;  %995 = vmatpush3.bf16.msra.mxu1 %v981_v14  ;;  %v1013_v20 = vld [vmem:[%s1088_s11 + $0x30] sm:$0xff]   ;;  %v1014_v21 = vld [vmem:[%s1088_s11 + $0x38] sm:$0xff]  }
  0x13   : > { %921 = vmatprep.mubr.msk.bf16.mxu0 %vm288_vm0, %v1009_v15  ;;  %976 = vmatpush3.bf16.msra.mxu0 %v973_v5 }
  0x14   : > { %978 = vmatprep.subr.bf16.mxu0 %v977_v7  ;;  %992 = vmatprep.subr.bf16.mxu1 %v985_v16 }
  0x16   : > { %996 = vmatpush3.bf16.msra.mxu1 %v985_v16 }
  0x17   : > { %980 = vmatpush3.bf16.msra.mxu0 %v977_v7 }
  0x18   : > { %982 = vmatprep.subr.bf16.mxu0 %v981_v14 }
  0x1a   : > { %922 = vmatmul.mubr.msk.bf16.gmra.mrb[4].mxu0 %vm288_vm0, %v1010_v17 }
  0x1b   : > { %925 = vmatprep.mubr.msk.bf16.mxu0 %vm288_vm0, %v1011_v18  ;;  %984 = vmatpush3.bf16.msra.mxu0 %v981_v14 }
  0x1c   : > { %986 = vmatprep.subr.bf16.mxu0 %v985_v16 }
  0x1f   : > { %988 = vmatpush3.bf16.msra.mxu0 %v985_v16 }
  0x22   : > { %926 = vmatmul.mubr.msk.bf16.gmra.mrb[8].mxu0 %vm288_vm0, %v1012_v19 }
  0x23   : > { %929 = vmatprep.mubr.msk.bf16.mxu0 %vm288_vm0, %v1013_v20 }
  0x2a   : > { %930 = vmatmul.mubr.msk.bf16.gmra.mrb[12].mxu0 %vm288_vm0, %v1014_v21 }
  0xe5   : > { %v919_v22 = vpop.f32.mrb[0].mxu0 }
  0xe6   : > { %v865_v23 = vpack.c.bf16 %v919_v22, %v919_v22  ;;  %v347_v24 = vpop.f32.mrb[1].mxu0  ;;  %952 = vmatprep.mubr.msk.f32.mxu1 %vm418_vm1, %v919_v22 }
  0xe7   : > { %v863_v25 = vpack.c.bf16 %v347_v24, %v347_v24  ;;  %v920_v26 = vpop.f32.mrb[2].mxu0  ;;  %949 = vmatprep.mubr.msk.f32.mxu0 %vm418_vm1, %v347_v24 }
  0xe8   : > { %696 = vst.msk [vmem:[%s1117_s20 + $0x8] sm:$0xf] %vm693_vm2, %v865_v23  ;;  %v866_v27 = vpack.c.bf16 %v920_v26, %v920_v26  ;;  %v350_v28 = vpop.f32.mrb[3].mxu0  ;;  %953 = vmatmul.mubr.msk.f32.vlgmr.msra.gmra.mrb[0].mxu1 %vm418_vm1, %v920_v26 }
  0xe9   : > { %694 = vst.msk [vmem:[%s1117_s20] sm:$0xf] %vm693_vm2, %v863_v25  ;;  %v864_v29 = vpack.c.bf16 %v350_v28, %v350_v28  ;;  %950 = vmatmul.mubr.msk.f32.vlgmr.msra.gmra.mrb[16].mxu0 %vm418_vm1, %v350_v28 }
  0xea   : > { %697 = vst.msk [vmem:[%s1117_s20 + $0xc] sm:$0xf] %vm693_vm2, %v866_v27 }
  0xeb   : > { %695 = vst.msk [vmem:[%s1117_s20 + $0x4] sm:$0xf] %vm693_vm2, %v864_v29 }
  0xed   : > { %v923_v30 = vpop.f32.mrb[4].mxu0 }
  0xee   : > { %v869_v31 = vpack.c.bf16 %v923_v30, %v923_v30  ;;  %v363_v32 = vpop.f32.mrb[5].mxu0 }
  0xef   : > { %v867_v33 = vpack.c.bf16 %v363_v32, %v363_v32  ;;  %v924_v34 = vpop.f32.mrb[6].mxu0  ;;  %955 = vmatprep.mubr.msk.f32.mxu1 %vm418_vm1, %v363_v32 }
  0xf0   : > { %700 = vst.msk [vmem:[%s1117_s20 + $0x18] sm:$0xf] %vm693_vm2, %v869_v31  ;;  %v870_v35 = vpack.c.bf16 %v924_v34, %v924_v34  ;;  %v366_v36 = vpop.f32.mrb[7].mxu0 }
  0xf1   : > { %698 = vst.msk [vmem:[%s1117_s20 + $0x10] sm:$0xf] %vm693_vm2, %v867_v33  ;;  %v868_v37 = vpack.c.bf16 %v366_v36, %v366_v36  ;;  %956 = vmatmul.mubr.msk.f32.gmra.mrb[2].mxu1 %vm418_vm1, %v366_v36 }
  0xf2   : > { %701 = vst.msk [vmem:[%s1117_s20 + $0x1c] sm:$0xf] %vm693_vm2, %v870_v35  ;;  %958 = vmatprep.mubr.msk.f32.mxu1 %vm418_vm1, %v923_v30 }
  0xf3   : > { %699 = vst.msk [vmem:[%s1117_s20 + $0x14] sm:$0xf] %vm693_vm2, %v868_v37 }
  0xf5   : > { %v927_v38 = vpop.f32.mrb[8].mxu0  ;;  %959 = vmatmul.mubr.msk.f32.gmra.mrb[4].mxu1 %vm418_vm1, %v924_v34 }
  0xf6   : > { %v873_v39 = vpack.c.bf16 %v927_v38, %v927_v38  ;;  %v379_v40 = vpop.f32.mrb[9].mxu0 }
  0xf7   : > { %v871_v41 = vpack.c.bf16 %v379_v40, %v379_v40  ;;  %v928_v42 = vpop.f32.mrb[10].mxu0  ;;  %961 = vmatprep.mubr.msk.f32.mxu1 %vm418_vm1, %v379_v40 }
  0xf8   : > { %704 = vst.msk [vmem:[%s1117_s20 + $0x28] sm:$0xf] %vm693_vm2, %v873_v39  ;;  %v874_v43 = vpack.c.bf16 %v928_v42, %v928_v42  ;;  %v382_v44 = vpop.f32.mrb[11].mxu0 }
  0xf9   : > { %702 = vst.msk [vmem:[%s1117_s20 + $0x20] sm:$0xf] %vm693_vm2, %v871_v41  ;;  %v872_v45 = vpack.c.bf16 %v382_v44, %v382_v44  ;;  %962 = vmatmul.mubr.msk.f32.gmra.mrb[6].mxu1 %vm418_vm1, %v382_v44 }
  0xfa   : > { %705 = vst.msk [vmem:[%s1117_s20 + $0x2c] sm:$0xf] %vm693_vm2, %v874_v43  ;;  %964 = vmatprep.mubr.msk.f32.mxu1 %vm418_vm1, %v927_v38 }
  0xfb   : > { %703 = vst.msk [vmem:[%s1117_s20 + $0x24] sm:$0xf] %vm693_vm2, %v872_v45 }
  0xfd   : > { %v931_v46 = vpop.f32.mrb[12].mxu0  ;;  %965 = vmatmul.mubr.msk.f32.gmra.mrb[8].mxu1 %vm418_vm1, %v928_v42 }
  0xfe   : > { %v877_v47 = vpack.c.bf16 %v931_v46, %v931_v46  ;;  %v395_v48 = vpop.f32.mrb[13].mxu0 }
  0xff   : > { %v875_v49 = vpack.c.bf16 %v395_v48, %v395_v48  ;;  %v932_v50 = vpop.f32.mrb[14].mxu0  ;;  %967 = vmatprep.mubr.msk.f32.mxu1 %vm418_vm1, %v395_v48 }
 0x100   : > { %708 = vst.msk [vmem:[%s1117_s20 + $0x38] sm:$0xf] %vm693_vm2, %v877_v47  ;;  %v878_v51 = vpack.c.bf16 %v932_v50, %v932_v50  ;;  %v398_v52 = vpop.f32.mrb[15].mxu0 }
 0x101   : > { %706 = vst.msk [vmem:[%s1117_s20 + $0x30] sm:$0xf] %vm693_vm2, %v875_v49  ;;  %v876_v53 = vpack.c.bf16 %v398_v52, %v398_v52  ;;  %968 = vmatmul.mubr.msk.f32.gmra.mrb[10].mxu1 %vm418_vm1, %v398_v52 }
 0x102   : > { %709 = vst.msk [vmem:[%s1117_s20 + $0x3c] sm:$0xf] %vm693_vm2, %v878_v51  ;;  %970 = vmatprep.mubr.msk.f32.mxu1 %vm418_vm1, %v931_v46 }
 0x103   : > { %707 = vst.msk [vmem:[%s1117_s20 + $0x34] sm:$0xf] %vm693_vm2, %v876_v53 }
 0x105   : > { %971 = vmatmul.mubr.msk.f32.gmra.mrb[12].mxu1 %vm418_vm1, %v932_v50 }
 0x1bb   : > { %v954_v54 = vpop.f32.mrb[0].mxu1 }
 0x1bc   : > { %616 = vst.msk [vmem:[%s1171_s24 + $0x18] sm:$0xff] %vm612_vm3, %v954_v54  ;;  %v951_v55 = vpop.f32.mrb[16].mxu0  ;;  %v543_v56 = vpop.f32.mrb[1].mxu1 }
 0x1bd   : > { %614 = vst.msk [vmem:[%s1171_s24 + $0x8] sm:$0xff] %vm612_vm3, %v951_v55  ;;  %615 = vst.msk [vmem:[%s1171_s24 + $0x10] sm:$0xff] %vm612_vm3, %v543_v56  ;;  %v533_v57 = vpop.f32.mrb[17].mxu0 }
 0x1be   : > { %613 = vst.msk [vmem:[%s1171_s24] sm:$0xff] %vm612_vm3, %v533_v57 }
 0x1c4   : > { %v957_v58 = vpop.f32.mrb[2].mxu1 }
 0x1c5   : > { %618 = vst.msk [vmem:[%s1171_s24 + $0x28] sm:$0xff] %vm612_vm3, %v957_v58  ;;  %v553_v59 = vpop.f32.mrb[3].mxu1 }
 0x1c6   : > { %617 = vst.msk [vmem:[%s1171_s24 + $0x20] sm:$0xff] %vm612_vm3, %v553_v59 }
 0x1c8   : > { %v960_v60 = vpop.f32.mrb[4].mxu1 }
 0x1c9   : > { %620 = vst.msk [vmem:[%s1171_s24 + $0x38] sm:$0xff] %vm612_vm3, %v960_v60  ;;  %v563_v61 = vpop.f32.mrb[5].mxu1 }
 0x1ca   : > { %619 = vst.msk [vmem:[%s1171_s24 + $0x30] sm:$0xff] %vm612_vm3, %v563_v61 }
 0x1cc   : > { %v963_v62 = vpop.f32.mrb[6].mxu1 }
 0x1cd   : > { %622 = vst.msk [vmem:[%s1171_s24 + $0x48] sm:$0xff] %vm612_vm3, %v963_v62  ;;  %v573_v63 = vpop.f32.mrb[7].mxu1 }
 0x1ce   : > { %621 = vst.msk [vmem:[%s1171_s24 + $0x40] sm:$0xff] %vm612_vm3, %v573_v63 }
 0x1d0   : > { %v966_v0 = vpop.f32.mrb[8].mxu1 }
 0x1d1   : > { %624 = vst.msk [vmem:[%s1171_s24 + $0x58] sm:$0xff] %vm612_vm3, %v966_v0  ;;  %v583_v1 = vpop.f32.mrb[9].mxu1 }
 0x1d2   : > { %623 = vst.msk [vmem:[%s1171_s24 + $0x50] sm:$0xff] %vm612_vm3, %v583_v1 }
 0x1d4   : > { %v969_v2 = vpop.f32.mrb[10].mxu1 }
 0x1d5   : > { %626 = vst.msk [vmem:[%s1171_s24 + $0x68] sm:$0xff] %vm612_vm3, %v969_v2  ;;  %v593_v3 = vpop.f32.mrb[11].mxu1 }
 0x1d6   : > { %625 = vst.msk [vmem:[%s1171_s24 + $0x60] sm:$0xff] %vm612_vm3, %v593_v3 }
 0x1d8   : > { %v972_v4 = vpop.f32.mrb[12].mxu1 }
 0x1d9   : > { %628 = vst.msk [vmem:[%s1171_s24 + $0x78] sm:$0xff] %vm612_vm3, %v972_v4  ;;  %v603_v5 = vpop.f32.mrb[13].mxu1 }
 0x1da   : > { %627 = vst.msk [vmem:[%s1171_s24 + $0x70] sm:$0xff] %vm612_vm3, %v603_v5 }
 0x1db PF: > { %s15_s15 = sadd.s32 1, %s1021_s15  }
 0x1dc   : > { %p12_p4 = scmp.ge.s32.totalorder %s15_s15, 4  }
 0x1de   :  { %14 = sbr.rel (!%p12_p4) target bundleno = 1 (0x1), region = 74 }

</bundles_post_ra>
